<compile_context>
chip_gen: v7x
topology: tpu7x:2x2x1
jax: 0.10.0
libtpu: 0.0.40
codegen_flags: <defaults>
</compile_context>

<pallas_src>
import functools

import jax
import jax.numpy as jnp
from jax.experimental import pallas as pl
from jax.experimental.pallas import tpu as pltpu


def _round_up(x, m):
    return (x + m - 1) // m * m


def pospool_xyz_kernel(features_ref, coords_ref, centers_ref, mask_ref,
                       w_ref, shift_ref, out_ref, *, inv_norm):
    """One grid step = tile_n voxels.

    features_ref : (tile_n * ns, C)   matmul dtype (bf16 by default)
    coords_ref   : (tile_n, ns, 3)    f32
    centers_ref  : (tile_n, 4)        f32  (bs, x, y, z)
    mask_ref     : (tile_n, ns)       f32  (0/1)
    w_ref        : (C, Cout)          matmul dtype, BN scale pre-folded
    shift_ref    : (1, Cout)          f32  folded BN shift
    out_ref      : (tile_n, Cout)     f32
    """
    tn, ns, _ = coords_ref.shape
    cout = out_ref.shape[-1]

    # ---- proj_layer: Linear(no bias, BN scale folded) -> +shift -> ReLU (MXU) ----
    h = jnp.dot(features_ref[...], w_ref[...],
                preferred_element_type=jnp.float32)              # (tn*ns, Cout) f32
    h = jnp.maximum(h + shift_ref[...], 0.0)
    h = h.reshape(tn, ns, cout)

    # ---- geometry (the torch.no_grad block), f32 on the VPU ----
    rel = coords_ref[...] - centers_ref[:, 1:4][:, None, :]       # (tn, ns, 3)
    dist = jnp.sum(rel * rel, axis=2, keepdims=True)              # (tn, ns, 1)

    # masked-mean weights: mask / clamp(sum(mask), min=1), folded into geo weights.
    m = mask_ref[...]                                             # (tn, ns)
    denom = jnp.maximum(jnp.sum(m, axis=1, keepdims=True), 1.0)   # (tn, 1)
    row_w = (m / denom)[:, :, None]                               # (tn, ns, 1)

    gx = rel[:, :, 0:1] * inv_norm[0] * row_w
    gy = rel[:, :, 1:2] * inv_norm[1] * row_w
    gz = rel[:, :, 2:3] * inv_norm[2] * row_w
    gd = dist * inv_norm[3] * row_w

    # channel c is weighted by geo component (c % 4)  (== torch repeat(1,1,Cout//4)),
    # realized as a lane-index select (no concatenate / tile relayouts).
    lane = jax.lax.broadcasted_iota(jnp.int32, (tn, ns, cout), 2) % 4
    geo_w = jnp.where(lane == 0, gx,
            jnp.where(lane == 1, gy,
            jnp.where(lane == 2, gz, gd)))                        # (tn, ns, Cout)

    out_ref[...] = jnp.sum(h * geo_w, axis=1).astype(out_ref.dtype)


def pospool_forward(features, coords, centers, mask, w, scale, shift, v_size,
                    *, tile_n=512, matmul_dtype=jnp.bfloat16,
                    vmem_limit_bytes=48 * 1024 * 1024):
    """PosPool(kernel='xyz') forward. Returns (N, Cout) float32."""
    N, ns, C = features.shape
    Cout = w.shape[1]
    assert Cout % 4 == 0, "feature dimensions divided by 4 (xyzd)"

    # Tile size: large enough to amortize the ~0.35us per-grid-step overhead, clamped
    # so tiny inputs aren't padded to a huge tile.  Must be a multiple of 8 (sublanes).
    tile_n = max(8, min(int(tile_n), _round_up(N, 8)))
    tile_n = _round_up(tile_n, 8)
    n_pad = _round_up(N, tile_n)

    f32 = jnp.float32
    features = jnp.asarray(features, f32)
    coords = jnp.asarray(coords, f32)
    centers = jnp.asarray(centers, f32)
    mask = jnp.asarray(mask, f32)
    if n_pad != N:
        p = n_pad - N
        features = jnp.pad(features, ((0, p), (0, 0), (0, 0)))
        coords = jnp.pad(coords, ((0, p), (0, 0), (0, 0)))
        centers = jnp.pad(centers, ((0, p), (0, 0)))
        mask = jnp.pad(mask, ((0, p), (0, 0)))       # mask=0 rows -> output rows = 0

    # Fold BN scale into the weight; cast only the MXU operands to matmul_dtype.
    w_eff = (jnp.asarray(w, f32) * jnp.asarray(scale, f32).reshape(1, Cout)
             ).astype(matmul_dtype)
    shift = jnp.asarray(shift, f32).reshape(1, Cout)
    feats2d = features.astype(matmul_dtype).reshape(n_pad * ns, C)

    # Fold the xyzd normalizer in as python scalars (no captured f32[4] constant).
    vx, vy, vz = float(v_size[0]), float(v_size[1]), float(v_size[2])
    inv_norm = (1.0 / vx, 1.0 / vy, 1.0 / vz, 1.0 / (vx * vx + vy * vy + vz * vz))

    kernel = functools.partial(pospool_xyz_kernel, inv_norm=inv_norm)
    itemsize = jnp.dtype(matmul_dtype).itemsize
    cost = pl.CostEstimate(
        flops=2 * n_pad * ns * C * Cout,
        transcendentals=0,
        bytes_accessed=int(feats2d.size * itemsize + coords.size * 4
                           + centers.size * 4 + mask.size * 4
                           + w_eff.size * itemsize + shift.size * 4
                           + n_pad * Cout * 4),
    )

    out = pl.pallas_call(
        kernel,
        out_shape=jax.ShapeDtypeStruct((n_pad, Cout), jnp.float32),
        grid_spec=pltpu.PrefetchScalarGridSpec(
            num_scalar_prefetch=0,
            grid=(n_pad // tile_n,),
            in_specs=[
                pl.BlockSpec((tile_n * ns, C), lambda i: (i, 0)),    # features (2-D)
                pl.BlockSpec((tile_n, ns, 3), lambda i: (i, 0, 0)),  # coords
                pl.BlockSpec((tile_n, 4), lambda i: (i, 0)),         # centers
                pl.BlockSpec((tile_n, ns), lambda i: (i, 0)),        # mask
                pl.BlockSpec((C, Cout), lambda i: (0, 0)),           # folded weight
                pl.BlockSpec((1, Cout), lambda i: (0, 0)),           # folded BN shift
            ],
            out_specs=pl.BlockSpec((tile_n, Cout), lambda i: (i, 0)),
        ),
        compiler_params=pltpu.CompilerParams(
            dimension_semantics=("parallel",),   # shards grid across v7x's 2 TCs
            vmem_limit_bytes=vmem_limit_bytes,   # default tile uses ~20-25 MiB
        ),
        cost_estimate=cost,
    )(feats2d, coords, centers, mask, w_eff, shift)
    return out[:N]


def pospool_ref(features, coords, centers, mask, w, scale, shift, v_size,
                matmul_dtype=jnp.float32):
    """Pure-JAX reference for PosPool(kernel='xyz') with eval-mode BN.

    matmul_dtype=float32 reproduces the PyTorch f32 forward (the scale folding is
    mathematically identical to Linear -> BN(eval)); matmul_dtype=bfloat16 quantizes
    the Linear operands exactly like the Pallas kernel's default configuration.
    """
    rel = coords - centers[:, 1:4][:, None, :]
    dist = jnp.sum(rel ** 2, axis=2, keepdims=True)
    norm = jnp.array(
        [v_size[0], v_size[1], v_size[2],
         v_size[0] ** 2 + v_size[1] ** 2 + v_size[2] ** 2], jnp.float32)
    geo = jnp.concatenate([rel, dist], axis=2) / norm
    N, ns, C = features.shape
    Cout = w.shape[1]
    w_eff = (w * scale.reshape(1, Cout)).astype(matmul_dtype).astype(jnp.float32)
    x = features.astype(matmul_dtype).astype(jnp.float32).reshape(-1, C)
    h = jnp.maximum(x @ w_eff + shift.reshape(1, Cout), 0.0)
    h = h.reshape(N, ns, Cout)
    h = h * jnp.tile(geo, (1, 1, Cout // 4))
    h = h * mask[:, :, None]
    return jnp.sum(h, axis=1) / jnp.maximum(
        jnp.sum(mask, axis=1, keepdims=True), 1.0)


if __name__ == "__main__":
    N, ns, C, Cout = 16, 8, 32, 32          # proj_specs = [32, 32]
    v_size = (0.1, 0.1, 0.2)

    key = jax.random.PRNGKey(0)
    kf, kc, kctr, km, kw, kg, kb, kmu, kvv = jax.random.split(key, 9)

    features = jax.random.normal(kf, (N, ns, C), jnp.float32)
    coords = jax.random.normal(kc, (N, ns, 3), jnp.float32)
    centers = jnp.concatenate(
        [jnp.zeros((N, 1), jnp.float32),                       # batch index column
         jax.random.normal(kctr, (N, 3), jnp.float32)], axis=1)
    mask = (jax.random.uniform(km, (N, ns)) > 0.3).astype(jnp.float32)

    # Deterministic parameter init (Linear weight + BatchNorm1d params/stats).
    w = jax.random.normal(kw, (C, Cout), jnp.float32) * 0.1
    gamma = 1.0 + 0.1 * jax.random.normal(kg, (Cout,), jnp.float32)
    beta = 0.1 * jax.random.normal(kb, (Cout,), jnp.float32)
    running_mean = 0.1 * jax.random.normal(kmu, (Cout,), jnp.float32)
    running_var = 0.5 + jnp.abs(jax.random.normal(kvv, (Cout,), jnp.float32))
    eps = 1e-5
    scale = (gamma / jnp.sqrt(running_var + eps)).reshape(1, Cout)
    shift = (beta - running_mean * scale[0]).reshape(1, Cout)

    # 1) default config (bf16 MXU operands) vs. a matched-quantization reference
    out = pospool_forward(features, coords, centers, mask, w, scale, shift, v_size)
    out = jax.block_until_ready(out)
    ref = pospool_ref(features, coords, centers, mask, w, scale, shift, v_size,
                      matmul_dtype=jnp.bfloat16)
    assert out.shape == (N, Cout)
    assert jnp.allclose(out, ref, rtol=2e-3, atol=2e-3), "bf16 path mismatch"

    # 2) full-f32 path reproduces the PyTorch (eval-BN) forward
    out32 = pospool_forward(features, coords, centers, mask, w, scale, shift,
                            v_size, matmul_dtype=jnp.float32)
    out32 = jax.block_until_ready(out32)
    ref32 = pospool_ref(features, coords, centers, mask, w, scale, shift, v_size,
                        matmul_dtype=jnp.float32)
    assert jnp.allclose(out32, ref32, rtol=2e-3, atol=2e-3), "f32 path mismatch"

    # 3) ragged N (exercises the zero-padded last tile path)
    Nr = 13
    out_r = pospool_forward(features[:Nr], coords[:Nr], centers[:Nr], mask[:Nr],
                            w, scale, shift, v_size)
    out_r = jax.block_until_ready(out_r)
    assert out_r.shape == (Nr, Cout)
    assert jnp.allclose(out_r, ref[:Nr], rtol=2e-3, atol=2e-3), "ragged-N mismatch"

    print("KERNEL_OK")
</pallas_src>

<mosaic_0001>
module attributes {stable_mosaic.version = 11 : i64} {
  func.func @pospool_xyz_kernel(%arg0: i32, %arg1: memref<128x32xbf16, #tpu.memory_space<vmem>>, %arg2: memref<16x8x3xf32, #tpu.memory_space<vmem>>, %arg3: memref<16x4xf32, #tpu.memory_space<vmem>>, %arg4: memref<16x8xf32, #tpu.memory_space<vmem>>, %arg5: memref<32x32xbf16, #tpu.memory_space<vmem>>, %arg6: memref<1x32xf32, #tpu.memory_space<vmem>>, %arg7: memref<16x32xf32, #tpu.memory_space<vmem>>) attributes {dimension_semantics = [#tpu.dimension_semantics<parallel>], iteration_bounds = array<i64: 1>, scalar_prefetch = 0 : i64, scratch_operands = 0 : i64, tpu.core_type = #tpu.core_type<tc>, window_params = [{transform_indices = @transform_0, window_bounds = array<i64: 128, 32>}, {transform_indices = @transform_1, window_bounds = array<i64: 16, 8, 3>}, {transform_indices = @transform_2, window_bounds = array<i64: 16, 4>}, {transform_indices = @transform_3, window_bounds = array<i64: 16, 8>}, {pipeline_mode = #tpu.pipeline_mode<synchronous>, transform_indices = @transform_4, window_bounds = array<i64: 32, 32>}, {pipeline_mode = #tpu.pipeline_mode<synchronous>, transform_indices = @transform_5, window_bounds = array<i64: 1, 32>}, {transform_indices = @transform_6, window_bounds = array<i64: 16, 32>}]} {
    %c0 = arith.constant 0 : index
    %c0_0 = arith.constant 0 : index
    %0 = vector.load %arg1[%c0, %c0_0] : memref<128x32xbf16, #tpu.memory_space<vmem>>, vector<128x32xbf16>
    %c0_1 = arith.constant 0 : index
    %c0_2 = arith.constant 0 : index
    %1 = vector.load %arg5[%c0_1, %c0_2] : memref<32x32xbf16, #tpu.memory_space<vmem>>, vector<32x32xbf16>
    %cst = arith.constant dense<0.000000e+00> : vector<128x32xf32>
    %2 = tpu.matmul %0, %1, %cst {dimension_numbers = #tpu.dot_dimension_numbers<[1], [0], [0], [1], [0, 0, 1, 1], [], []>} : vector<128x32xbf16>, vector<32x32xbf16>, vector<128x32xf32> -> vector<128x32xf32>
    %c0_3 = arith.constant 0 : index
    %c0_4 = arith.constant 0 : index
    %3 = vector.load %arg6[%c0_3, %c0_4] : memref<1x32xf32, #tpu.memory_space<vmem>>, vector<1x32xf32>
    %4 = vector.broadcast %3 : vector<1x32xf32> to vector<128x32xf32>
    %5 = arith.addf %2, %4 : vector<128x32xf32>
    %cst_5 = arith.constant 0.000000e+00 : f32
    %6 = vector.broadcast %cst_5 : f32 to vector<128x32xf32>
    %7 = arith.maximumf %5, %6 : vector<128x32xf32>
    %8 = vector.shape_cast %7 : vector<128x32xf32> to vector<16x8x32xf32>
    %c0_6 = arith.constant 0 : index
    %c0_7 = arith.constant 0 : index
    %c0_8 = arith.constant 0 : index
    %9 = vector.load %arg2[%c0_6, %c0_7, %c0_8] : memref<16x8x3xf32, #tpu.memory_space<vmem>>, vector<16x8x3xf32>
    %c0_9 = arith.constant 0 : index
    %c1 = arith.constant 1 : index
    %10 = vector.load %arg3[%c0_9, %c1] : memref<16x4xf32, #tpu.memory_space<vmem>>, vector<16x3xf32>
    %11 = vector.shape_cast %10 : vector<16x3xf32> to vector<16x1x3xf32>
    %12 = vector.broadcast %11 : vector<16x1x3xf32> to vector<16x8x3xf32>
    %13 = arith.subf %9, %12 : vector<16x8x3xf32>
    %14 = arith.mulf %13, %13 : vector<16x8x3xf32>
    %cst_10 = arith.constant dense<0.000000e+00> : vector<16x8xf32>
    %15 = vector.multi_reduction <add>, %14, %cst_10 [2] : vector<16x8x3xf32> to vector<16x8xf32>
    %16 = vector.shape_cast %15 : vector<16x8xf32> to vector<16x8x1xf32>
    %c0_11 = arith.constant 0 : index
    %c0_12 = arith.constant 0 : index
    %17 = vector.load %arg4[%c0_11, %c0_12] : memref<16x8xf32, #tpu.memory_space<vmem>>, vector<16x8xf32>
    %cst_13 = arith.constant dense<0.000000e+00> : vector<16xf32>
    %18 = vector.multi_reduction <add>, %17, %cst_13 [1] : vector<16x8xf32> to vector<16xf32>
    %19 = vector.shape_cast %18 : vector<16xf32> to vector<16x1xf32>
    %cst_14 = arith.constant 1.000000e+00 : f32
    %20 = vector.broadcast %cst_14 : f32 to vector<16x1xf32>
    %21 = arith.maximumf %19, %20 : vector<16x1xf32>
    %22 = vector.broadcast %21 : vector<16x1xf32> to vector<16x8xf32>
    %23 = arith.divf %17, %22 : vector<16x8xf32>
    %24 = vector.shape_cast %23 : vector<16x8xf32> to vector<16x8x1xf32>
    %25 = vector.extract_strided_slice %13 {offsets = [0, 0, 0], sizes = [16, 8, 1], strides = [1, 1, 1]} : vector<16x8x3xf32> to vector<16x8x1xf32>
    %cst_15 = arith.constant 1.000000e+01 : f32
    %26 = vector.broadcast %cst_15 : f32 to vector<16x8x1xf32>
    %27 = arith.mulf %25, %26 : vector<16x8x1xf32>
    %28 = arith.mulf %27, %24 : vector<16x8x1xf32>
    %29 = vector.extract_strided_slice %13 {offsets = [0, 0, 1], sizes = [16, 8, 1], strides = [1, 1, 1]} : vector<16x8x3xf32> to vector<16x8x1xf32>
    %cst_16 = arith.constant 1.000000e+01 : f32
    %30 = vector.broadcast %cst_16 : f32 to vector<16x8x1xf32>
    %31 = arith.mulf %29, %30 : vector<16x8x1xf32>
    %32 = arith.mulf %31, %24 : vector<16x8x1xf32>
    %33 = vector.extract_strided_slice %13 {offsets = [0, 0, 2], sizes = [16, 8, 1], strides = [1, 1, 1]} : vector<16x8x3xf32> to vector<16x8x1xf32>
    %cst_17 = arith.constant 5.000000e+00 : f32
    %34 = vector.broadcast %cst_17 : f32 to vector<16x8x1xf32>
    %35 = arith.mulf %33, %34 : vector<16x8x1xf32>
    %36 = arith.mulf %35, %24 : vector<16x8x1xf32>
    %cst_18 = arith.constant 16.666666 : f32
    %37 = vector.broadcast %cst_18 : f32 to vector<16x8x1xf32>
    %38 = arith.mulf %16, %37 : vector<16x8x1xf32>
    %39 = arith.mulf %38, %24 : vector<16x8x1xf32>
    %40 = tpu.iota {dimensions = array<i32: 2>} : vector<16x8x32xi32>
    %c4_i32 = arith.constant 4 : i32
    %c0_i32 = arith.constant 0 : i32
    %41 = arith.cmpi eq, %c4_i32, %c0_i32 : i32
    %c1_i32 = arith.constant 1 : i32
    %42 = arith.select %41, %c1_i32, %c4_i32 : i32
    %43 = vector.broadcast %42 : i32 to vector<16x8x32xi32>
    %44 = arith.remsi %40, %43 : vector<16x8x32xi32>
    %c0_i32_19 = arith.constant 0 : i32
    %45 = vector.broadcast %c0_i32_19 : i32 to vector<16x8x32xi32>
    %46 = arith.cmpi ne, %44, %45 : vector<16x8x32xi32>
    %c0_i32_20 = arith.constant 0 : i32
    %47 = vector.broadcast %c0_i32_20 : i32 to vector<16x8x32xi32>
    %48 = arith.cmpi slt, %44, %47 : vector<16x8x32xi32>
    %c0_i32_21 = arith.constant 0 : i32
    %49 = arith.cmpi slt, %42, %c0_i32_21 : i32
    %50 = vector.broadcast %49 : i1 to vector<16x8x32xi1>
    %51 = vector.broadcast %50 : vector<16x8x32xi1> to vector<16x8x32xi1>
    %52 = arith.xori %48, %51 : vector<16x8x32xi1>
    %53 = arith.andi %52, %46 : vector<16x8x32xi1>
    %54 = vector.broadcast %42 : i32 to vector<16x8x32xi32>
    %55 = arith.addi %44, %54 : vector<16x8x32xi32>
    %56 = arith.select %53, %55, %44 : vector<16x8x32xi1>, vector<16x8x32xi32>
    %c0_i32_22 = arith.constant 0 : i32
    %57 = vector.broadcast %c0_i32_22 : i32 to vector<16x8x32xi32>
    %58 = arith.cmpi eq, %56, %57 : vector<16x8x32xi32>
    %c1_i32_23 = arith.constant 1 : i32
    %59 = vector.broadcast %c1_i32_23 : i32 to vector<16x8x32xi32>
    %60 = arith.cmpi eq, %56, %59 : vector<16x8x32xi32>
    %c2_i32 = arith.constant 2 : i32
    %61 = vector.broadcast %c2_i32 : i32 to vector<16x8x32xi32>
    %62 = arith.cmpi eq, %56, %61 : vector<16x8x32xi32>
    %63 = vector.shape_cast %36 : vector<16x8x1xf32> to vector<16x8x1xf32>
    %64 = vector.broadcast %63 : vector<16x8x1xf32> to vector<16x8x32xf32>
    %65 = vector.shape_cast %39 : vector<16x8x1xf32> to vector<16x8x1xf32>
    %66 = vector.broadcast %65 : vector<16x8x1xf32> to vector<16x8x32xf32>
    %67 = arith.select %62, %64, %66 : vector<16x8x32xi1>, vector<16x8x32xf32>
    %68 = vector.shape_cast %32 : vector<16x8x1xf32> to vector<16x8x1xf32>
    %69 = vector.broadcast %68 : vector<16x8x1xf32> to vector<16x8x32xf32>
    %70 = arith.select %60, %69, %67 : vector<16x8x32xi1>, vector<16x8x32xf32>
    %71 = vector.shape_cast %28 : vector<16x8x1xf32> to vector<16x8x1xf32>
    %72 = vector.broadcast %71 : vector<16x8x1xf32> to vector<16x8x32xf32>
    %73 = arith.select %58, %72, %70 : vector<16x8x32xi1>, vector<16x8x32xf32>
    %74 = arith.mulf %8, %73 : vector<16x8x32xf32>
    %cst_24 = arith.constant dense<0.000000e+00> : vector<16x32xf32>
    %75 = vector.multi_reduction <add>, %74, %cst_24 [1] : vector<16x8x32xf32> to vector<16x32xf32>
    %c0_25 = arith.constant 0 : index
    %c0_26 = arith.constant 0 : index
    %76 = vector.load %arg7[%c0_25, %c0_26] : memref<16x32xf32, #tpu.memory_space<vmem>>, vector<16x32xf32>
    tpu.vector_store %arg7[%c0_25, %c0_26], %75 {strides = array<i32>} : memref<16x32xf32, #tpu.memory_space<vmem>>, vector<16x32xf32>,
    return
  }
  func.func @transform_0(%arg0: i32) -> (i32, i32) {
    %c0_i32 = arith.constant 0 : i32
    %c0_i32_0 = arith.constant 0 : i32
    return %arg0, %c0_i32 : i32, i32
  }
  func.func @transform_1(%arg0: i32) -> (i32, i32, i32) {
    %c0_i32 = arith.constant 0 : i32
    %c0_i32_0 = arith.constant 0 : i32
    %c0_i32_1 = arith.constant 0 : i32
    return %arg0, %c0_i32, %c0_i32_0 : i32, i32, i32
  }
  func.func @transform_2(%arg0: i32) -> (i32, i32) {
    %c0_i32 = arith.constant 0 : i32
    %c0_i32_0 = arith.constant 0 : i32
    return %arg0, %c0_i32 : i32, i32
  }
  func.func @transform_3(%arg0: i32) -> (i32, i32) {
    %c0_i32 = arith.constant 0 : i32
    %c0_i32_0 = arith.constant 0 : i32
    return %arg0, %c0_i32 : i32, i32
  }
  func.func @transform_4(%arg0: i32) -> (i32, i32) {
    %c0_i32 = arith.constant 0 : i32
    %c0_i32_0 = arith.constant 0 : i32
    %c0_i32_1 = arith.constant 0 : i32
    return %c0_i32, %c0_i32_0 : i32, i32
  }
  func.func @transform_5(%arg0: i32) -> (i32, i32) {
    %c0_i32 = arith.constant 0 : i32
    %c0_i32_0 = arith.constant 0 : i32
    %c0_i32_1 = arith.constant 0 : i32
    return %c0_i32, %c0_i32_0 : i32, i32
  }
  func.func @transform_6(%arg0: i32) -> (i32, i32) {
    %c0_i32 = arith.constant 0 : i32
    %c0_i32_0 = arith.constant 0 : i32
    return %arg0, %c0_i32 : i32, i32
  }
}

</mosaic_0001>

<bundles_post_ra>
// kernel: tpu_custom_call.1
= control target key start
LH: loop header
LB: loop body
LE: loop exit
PB: predicated region body
PF: predicated region fallthrough
CT: control target
= control target key end

     0   :  { %v266_v0 = vlaneseq  ;;  %v1365_v1 = vmov 1966171168   ;;  %s2110_s0 = inlined_call_operand.vmem [shape: bf16[128,32], index: 0, kind: input, shape index: {}]   ;;  %s2111_s1 = inlined_call_operand.vmem [shape: f32[16,8,3], index: 1, kind: input, shape index: {}]   ;;  %s2112_s2 = inlined_call_operand.vmem [shape: f32[16,4], index: 2, kind: input, shape index: {}]   ;;  %s2113_s3 = inlined_call_operand.vmem [shape: f32[16,8], index: 3, kind: input, shape index: {}]   ;;  %s2114_s4 = inlined_call_operand.vmem [shape: bf16[32,32], index: 4, kind: input, shape index: {}]   ;;  %s2115_s5 = inlined_call_operand.vmem [shape: f32[1,32], index: 5, kind: input, shape index: {}]   ;;  %s2116_s6 = inlined_call_operand.hbm [shape: f32[16,32], index: 6, kind: output, shape index: {}]  }
   0x1   :  { %v264_v2 = vunpack.c.l.s4 %v1365_v1  ;;  %v258_v3 = vld [vmem:[%s2112_s2] sm:$0xff]  ;;  %v259_v7 = vld [vmem:[%s2112_s2 + $0x8] sm:$0xff] }
   0x2   :  { %v1412_v4 = vshrl.u32 %v266_v0, 7  ;;  %v262_v6 = vcombine.high %v258_v3, %v258_v3 }
   0x3   :  { %v265_v5 = vunpack.c.0.s8 %v264_v2 }
   0x4   :  { %v1419_v10 = vsub.s32 0, %v1412_v4 }
   0x5   :  { %v268_v8 = vsub.s32 %v265_v5, %v1412_v4 }
   0x7   :  { %v269_v9 = vrot.slane %v258_v3, %v268_v8  ;;  %v276_v11 = vrot.slane %v262_v6, %v268_v8  ;;  %v318_v12 = vrot.slane %v259_v7, %v268_v8 }
   0x9   :  { %v285_v13 = vrot.slane %v269_v9, %v268_v8  ;;  %v277_v14 = vcombine.high %v269_v9, %v269_v9  ;;  %v292_v15 = vrot.slane %v276_v11, %v268_v8  ;;  %v278_v16 = vcombine.high %v276_v11, %v276_v11 }
   0xa   :  { %11 = vsyncpa [#allocation3], 0  ;;  %v326_v20 = vcombine.high %v318_v12, %v318_v12  ;;  %s1366_s25 = smov 127   ;;  %v311_v30 = vcombine.high %v259_v7, %v259_v7  ;;  %v334_v32 = vrot.slane %v318_v12, %v268_v8  ;;  %v1456_v51 = vld [vmem:[%s2113_s3] sm:$0xff]  ;;  %vm555_vm0 = vcmask 64512   ;;  %v1462_v53 = vld [vmem:[%s2113_s3 + $0x8] sm:$0xff] }
   0xb   :  { %v363_v17 = vrot.slane %v285_v13, %v1419_v10  ;;  %v307_v18 = vcombine.high %v285_v13, %v285_v13  ;;  %v306_v19 = vrot.slane %v278_v16, %v268_v8  ;;  %v379_v22 = vrot.slane %v292_v15, %v1419_v10  ;;  %v242_v55 = vld [vmem:[%s2111_s1] sm:$0xff]  ;;  %v244_v57 = vld [vmem:[%s2111_s1 + $0x10] sm:$0xff]  ;;  %v247_v1 = vld [vmem:[%s2111_s1 + $0x28] sm:$0xff] }
   0xc   :  { %v299_v23 = vrot.slane %v277_v14, %v268_v8  ;;  %v348_v25 = vrot.slane %v326_v20, %v268_v8  ;;  %v308_v27 = vcombine.high %v292_v15, %v292_v15  ;;  %v325_v35 = vrot.slane %v311_v30, %v268_v8  ;;  %v246_v60 = vld [vmem:[%s2111_s1 + $0x20] sm:$0xff]  ;;  %v251_v11 = vld [vmem:[%s2111_s1 + $0x48] sm:$0xff] }
   0xd   :  { %424 = vrot.lane.b32.xlu0 %v363_v17, %s1366_s25  ;;  %v371_v21 = vrot.slane %v307_v18, %v1419_v10  ;;  %v383_v24 = vrot.slane %v306_v19, %v1419_v10  ;;  %v310_v34 = vcombine.high %v306_v19, %v306_v19  ;;  %v395_v36 = vrot.slane %v334_v32, %v1419_v10 }
   0xe   :  { %v367_v26 = vrot.slane %v299_v23, %v1419_v10  ;;  %v399_v28 = vrot.slane %v348_v25, %v1419_v10  ;;  %v309_v29 = vcombine.high %v299_v23, %v299_v23  ;;  %v387_v31 = vrot.slane %v308_v27, %v1419_v10 }
   0xf   :  { %428 = vrot.lane.b32.xlu1 %v371_v21, %s1366_s25  ;;  %v356_v37 = vcombine.high %v334_v32, %v334_v32  ;;  %v391_v38 = vrot.slane %v310_v34, %v1419_v10  ;;  %v358_v39 = vcombine.high %v348_v25, %v348_v25  ;;  %v327_v40 = vcombine.high %v325_v35, %v325_v35  ;;  %v250_v21 = vld [vmem:[%s2111_s1 + $0x40] sm:$0xff] }
  0x10   :  { %v375_v33 = vrot.slane %v309_v29, %v1419_v10  ;;  %v341_v42 = vrot.slane %v325_v35, %v268_v8  ;;  %v556_v52 = vsel %vm555_vm0, %v1456_v51, 0.0  ;;  %v559_v54 = vsel %vm555_vm0, %v1462_v53, 0.0  ;;  %v243_v29 = vld [vmem:[%s2111_s1 + $0x8] sm:$0xff]  ;;  %v245_v35 = vld [vmem:[%s2111_s1 + $0x18] sm:$0xff] }
  0x11   :  { %432 = vrot.lane.b32.xlu0 %v379_v22, %s1366_s25  ;;  %v403_v41 = vrot.slane %v356_v37, %v1419_v10  ;;  %v407_v43 = vrot.slane %v358_v39, %v1419_v10  ;;  %v355_v44 = vrot.slane %v327_v40, %v268_v8  ;;  %vm504_vm1 = vcmask 23552   ;;  %v248_v37 = vld [vmem:[%s2111_s1 + $0x30] sm:$0xff] }
  0x12   :  { %v411_v45 = vrot.slane %v341_v42, %v1419_v10  ;;  %v357_v46 = vcombine.high %v341_v42, %v341_v42  ;;  %vm104_vm2 = vcmask 261120   ;;  %vm1209_vm6 = vcmask 1041409  }
  0x13   :  { %434 = vrot.lane.b32.xlu1 %v383_v24, %s1366_s25  ;;  %v415_v47 = vrot.slane %v355_v44, %v1419_v10  ;;  %v359_v48 = vcombine.high %v355_v44, %v355_v44  ;;  %vm1211_vm7 = vcmask 1042434   ;;  %vm1213_vm8 = vcmask 1043459  }
  0x14   :  { %v419_v49 = vrot.slane %v357_v46, %v1419_v10  ;;  %v252_v46 = vld [vmem:[%s2111_s1 + $0x50] sm:$0xff]  ;;  %vm1215_vm9 = vcmask 1044484   ;;  %vm1217_vm10 = vcmask 1045509   ;;  %vm1219_vm11 = vcmask 1046534  }
  0x15   :  { %426 = vrot.lane.b32.xlu0 %v367_v26, %s1366_s25  ;;  %v423_v50 = vrot.slane %v359_v48, %v1419_v10  ;;  %vm1221_vm12 = vcmask 1047559  }
  0x17   :  { %442 = vrot.lane.b32.xlu1 %v399_v28, %s1366_s25 }
  0x19   :  { %436 = vrot.lane.b32.xlu0 %v387_v31, %s1366_s25  ;;  %v254_v31 = vld [vmem:[%s2111_s1 + $0x60] sm:$0xff] }
  0x1b   :  { %430 = vrot.lane.b32.xlu1 %v375_v33, %s1366_s25  ;;  %v255_v33 = vld [vmem:[%s2111_s1 + $0x68] sm:$0xff] }
  0x1d   :  { %440 = vrot.lane.b32.xlu0 %v395_v36, %s1366_s25 }
  0x1f   :  { %438 = vrot.lane.b32.xlu1 %v391_v38, %s1366_s25 }
  0x21   :  { %444 = vrot.lane.b32.xlu0 %v403_v41, %s1366_s25 }
  0x23   :  { %446 = vrot.lane.b32.xlu1 %v407_v43, %s1366_s25  ;;  %v249_v43 = vld [vmem:[%s2111_s1 + $0x38] sm:$0xff] }
  0x25   :  { %448 = vrot.lane.b32.xlu0 %v411_v45, %s1366_s25 }
  0x27   :  { %450 = vrot.lane.b32.xlu1 %v415_v47, %s1366_s25 }
  0x29   :  { %452 = vrot.lane.b32.xlu0 %v419_v49, %s1366_s25 }
  0x2b   :  { %454 = vrot.lane.b32.xlu1 %v423_v50, %s1366_s25 }
  0x48   :  { %557 = vadd.xlane.f32.xlu0 %v556_v52 }
  0x4f   :  { %560 = vadd.xlane.f32.xlu1 %v559_v54  ;;  %v253_v54 = vld [vmem:[%s2111_s1 + $0x58] sm:$0xff] }
  0x7f   :  { %v425_v56 = vpop.permute.xlu0 %424 }
  0x80   :  { %v1471_v58 = vsub.f32 %v242_v55, %v425_v56 }
  0x81   :  { %v429_v59 = vpop.permute.xlu1 %428 }
  0x82   :  { %v1476_v61 = vsub.f32 %v244_v57, %v429_v59  ;;  %v488_v62 = vmul.f32 %v1471_v58, %v1471_v58  ;;  %v256_v59 = vld [vmem:[%s2111_s1 + $0x70] sm:$0xff] }
  0x83   :  { %v433_v63 = vpop.permute.xlu0 %432 }
  0x84   :  { %v1483_v2 = vsub.f32 %v246_v60, %v433_v63  ;;  %v505_v3 = vsel %vm504_vm1, %v488_v62, 0.0  ;;  %v490_v5 = vmul.f32 %v1476_v61, %v1476_v61 }
  0x85   :  { %v435_v6 = vpop.permute.xlu1 %434  ;;  %506 = vadd.xlane.f32.xlu0 %v505_v3 }
  0x86   :  { %v1488_v7 = vsub.f32 %v247_v1, %v435_v6  ;;  %v492_v8 = vmul.f32 %v1483_v2, %v1483_v2  ;;  %v511_v12 = vsel %vm504_vm1, %v490_v5, 0.0  ;;  %v257_v6 = vld [vmem:[%s2111_s1 + $0x78] sm:$0xff] }
  0x87   :  { %v427_v9 = vpop.permute.xlu0 %426 }
  0x88   :  { %v517_v13 = vsel %vm504_vm1, %v492_v8, 0.0  ;;  %v493_v14 = vmul.f32 %v1488_v7, %v1488_v7  ;;  %v1522_v34 = vsub.f32 %v243_v29, %v427_v9  ;;  %v1336_v29 = vld [vmem:[%s2110_s0 + $0x18] sm:$0xff]  }
  0x89   :  { %v443_v15 = vpop.permute.xlu1 %442  ;;  %518 = vadd.xlane.f32.xlu1 %v517_v13  ;;  %512 = vadd.xlane.f32.xlu0 %v511_v12 }
  0x8a   :  { %v1499_v16 = vsub.f32 %v251_v11, %v443_v15  ;;  %v520_v17 = vsel %vm504_vm1, %v493_v14, 0.0  ;;  %v489_v45 = vmul.f32 %v1522_v34, %v1522_v34 }
  0x8b   :  { %v437_v18 = vpop.permute.xlu0 %436 }
  0x8c   :  { %v497_v19 = vmul.f32 %v1499_v16, %v1499_v16  ;;  %v1538_v42 = vsub.f32 %v248_v37, %v437_v18  ;;  %v508_v55 = vsel %vm504_vm1, %v489_v45, 0.0 }
  0x8d   :  { %v431_v20 = vpop.permute.xlu1 %430  ;;  %521 = vadd.xlane.f32.xlu0 %v520_v17 }
  0x8e   :  { %v532_v22 = vsel %vm504_vm1, %v497_v19, 0.0  ;;  %v1536_v41 = vsub.f32 %v245_v35, %v431_v20  ;;  %v494_v56 = vmul.f32 %v1538_v42, %v1538_v42  ;;  %v1327_v20 = vld [vmem:[%s2114_s4] sm:$0xff]   ;;  %v1367_v35 = vmov 2  }
  0x8f   :  { %v441_v23 = vpop.permute.xlu0 %440  ;;  %1279 = vmatprep.subr.bf16.mxu0 %v1327_v20  ;;  %1299 = vmatprep.subr.bf16.mxu1 %v1327_v20 }
  0x90   :  { %v1508_v24 = vsub.f32 %v250_v21, %v441_v23  ;;  %v491_v50 = vmul.f32 %v1536_v41, %v1536_v41  ;;  %v523_v3 = vsel %vm504_vm1, %v494_v56, 0.0  ;;  %1280 = vmatpush3.bf16.msra.mxu0 %v1327_v20  ;;  %1301 = vmatpush3.bf16.msra.mxu1 %v1327_v20  ;;  %v1328_v21 = vld [vmem:[%s2114_s4 + $0x8] sm:$0xff]   ;;  %v612_v56 = vsub.s32 6, %v1412_v4 }
  0x91   :  { %v439_v25 = vpop.permute.xlu1 %438  ;;  %533 = vadd.xlane.f32.xlu0 %v532_v22  ;;  %1281 = vmatprep.subr.bf16.mxu0 %v1328_v21  ;;  %v1329_v22 = vld [vmem:[%s2110_s0] sm:$0xff]   ;;  %v1330_v23 = vld [vmem:[%s2110_s0 + $0x8] sm:$0xff]  }
  0x92   :  { %v496_v26 = vmul.f32 %v1508_v24, %v1508_v24  ;;  %v1551_v48 = vsub.f32 %v249_v43, %v439_v25  ;;  %v514_v62 = vsel %vm504_vm1, %v491_v50, 0.0  ;;  %1300 = vmatprep.subr.bf16.mxu1 %v1328_v21  ;;  %1283 = vmatprep.mubr.msk.bf16.mxu0 %vm104_vm2, %v1329_v22  ;;  %v1331_v25 = vld [vmem:[%s2110_s0 + $0x20] sm:$0xff]  }
  0x93   :  { %v445_v27 = vpop.permute.xlu0 %444  ;;  %1291 = vmatprep.mubr.msk.bf16.mxu1 %vm104_vm2, %v1331_v25  ;;  %1312 = vset.pattern.permute.xlu1 %v1367_v35 }
  0x94   :  { %v529_v28 = vsel %vm504_vm1, %v496_v26, 0.0  ;;  %v1556_v52 = vsub.f32 %v252_v46, %v445_v27  ;;  %v495_v63 = vmul.f32 %v1551_v48, %v1551_v48  ;;  %1282 = vmatpush3.bf16.msra.mxu0 %v1328_v21  ;;  %1302 = vmatpush3.bf16.msra.mxu1 %v1328_v21  ;;  %v1332_v26 = vld [vmem:[%s2110_s0 + $0x28] sm:$0xff]   ;;  %v1333_v27 = vld [vmem:[%s2110_s0 + $0x30] sm:$0xff]   ;;  %v584_v46 = vsub.s32 2, %v1412_v4 }
  0x95   :  { %v447_v30 = vpop.permute.xlu1 %446  ;;  %530 = vadd.xlane.f32.xlu1 %v529_v28  ;;  %v1335_v28 = vld [vmem:[%s2110_s0 + $0x10] sm:$0xff]   ;;  %1311 = vset.pattern.permute.xlu0 %v1367_v35  ;;  %v713_v35 = vmul.f32 5.0, %v1522_v34 }
  0x96   :  { %v1567_v60 = vsub.f32 %v253_v54, %v447_v30  ;;  %v498_v8 = vmul.f32 %v1556_v52, %v1556_v52  ;;  %v526_v11 = vsel %vm504_vm1, %v495_v63, 0.0  ;;  %v1334_v30 = vld [vmem:[%s2110_s0 + $0x38] sm:$0xff]  }
  0x97   :  { %v449_v32 = vpop.permute.xlu0 %448  ;;  %1284 = vmatmul.mubr.msk.bf16.vlgmr.msra.gmra.mrb[0].mxu0 %vm104_vm2, %v1330_v23  ;;  %1292 = vmatmul.mubr.msk.bf16.vlgmr.msra.gmra.mrb[0].mxu1 %vm104_vm2, %v1332_v26 }
  0x98   :  { %v1527_v36 = vsub.f32 %v254_v31, %v449_v32  ;;  %v499_v12 = vmul.f32 %v1567_v60, %v1567_v60  ;;  %v535_v13 = vsel %vm504_vm1, %v498_v8, 0.0  ;;  %1287 = vmatprep.mubr.msk.bf16.mxu0 %vm104_vm2, %v1335_v28  ;;  %1295 = vmatprep.mubr.msk.bf16.mxu1 %vm104_vm2, %v1333_v27 }
  0x99   :  { %v451_v38 = vpop.permute.xlu1 %450 }
  0x9a   :  { %v1532_v39 = vsub.f32 %v255_v33, %v451_v38  ;;  %v500_v40 = vmul.f32 %v1527_v36, %v1527_v36  ;;  %v538_v15 = vsel %vm504_vm1, %v499_v12, 0.0  ;;  %v577_v38 = vsub.s32 1, %v1412_v4 }
  0x9b   :  { %v453_v57 = vpop.permute.xlu0 %452 }
  0x9c   :  { %v541_v44 = vsel %vm504_vm1, %v500_v40, 0.0  ;;  %v501_v47 = vmul.f32 %v1532_v39, %v1532_v39  ;;  %v1572_v1 = vsub.f32 %v256_v59, %v453_v57 }
  0x9d   :  { %542 = vadd.xlane.f32.xlu1 %v541_v44  ;;  %v455_v5 = vpop.permute.xlu1 %454 }
  0x9e   :  { %v544_v49 = vsel %vm504_vm1, %v501_v47, 0.0  ;;  %v1580_v9 = vsub.f32 %v257_v6, %v455_v5  ;;  %v502_v14 = vmul.f32 %v1572_v1, %v1572_v1  ;;  %v598_v47 = vsub.s32 4, %v1412_v4 }
  0x9f   :  { %545 = vadd.xlane.f32.xlu0 %v544_v49  ;;  %1288 = vmatmul.mubr.msk.bf16.gmra.mrb[4].mxu0 %vm104_vm2, %v1336_v29  ;;  %v619_v5 = vsub.s32 7, %v1412_v4 }
  0xa0   :  { %v503_v17 = vmul.f32 %v1580_v9, %v1580_v9  ;;  %v547_v18 = vsel %vm504_vm1, %v502_v14, 0.0  ;;  %1296 = vmatmul.mubr.msk.bf16.gmra.mrb[4].mxu1 %vm104_vm2, %v1334_v30 }
  0xa1   :  { %509 = vadd.xlane.f32.xlu1 %v508_v55  ;;  %v591_v55 = vsub.s32 3, %v1412_v4 }
  0xa2   :  { %v550_v19 = vsel %vm504_vm1, %v503_v17, 0.0 }
  0xa3   :  { %515 = vadd.xlane.f32.xlu0 %v514_v62  ;;  %v605_v62 = vsub.s32 5, %v1412_v4 }
  0xa5   :  { %524 = vadd.xlane.f32.xlu1 %v523_v3 }
  0xa7   :  { %527 = vadd.xlane.f32.xlu0 %v526_v11 }
  0xa9   :  { %536 = vadd.xlane.f32.xlu1 %v535_v13 }
  0xab   :  { %539 = vadd.xlane.f32.xlu0 %v538_v15 }
  0xad   :  { %548 = vadd.xlane.f32.xlu1 %v547_v18 }
  0xaf   :  { %551 = vadd.xlane.f32.xlu0 %v550_v19 }
  0xd5   :  { %v558_v31 = vpop.xlane.xlu0 %557 }
  0xd6   :  { %v562_v32 = vmax.f32 %v558_v31, 1.0 }
  0xd8   :  { %1337 = vrcp.f32 %v562_v32  ;;  %v712_v32 = vmul.f32 5.0, %v1471_v58 }
  0xdc   :  { %v561_v33 = vpop.xlane.xlu1 %560 }
  0xdd   :  { %v563_v37 = vmax.f32 %v561_v33, 1.0 }
  0xdf   :  { %1339 = vrcp.f32 %v563_v37 }
  0xe2   :  { %v1338_v40 = vpop.eup %1337 }
  0xe3   :  { %v565_v43 = vmul.f32 %v1338_v40, %v1456_v51 }
  0xe5   :  { %v571_v44 = vrot.slane %v565_v43, %v1419_v10  ;;  %v578_v45 = vrot.slane %v565_v43, %v577_v38  ;;  %v585_v50 = vrot.slane %v565_v43, %v584_v46  ;;  %v599_v54 = vrot.slane %v565_v43, %v598_v47 }
  0xe6   :  { %v592_v51 = vrot.slane %v565_v43, %v591_v55  ;;  %v613_v59 = vrot.slane %v565_v43, %v612_v56  ;;  %v606_v3 = vrot.slane %v565_v43, %v605_v62  ;;  %v620_v8 = vrot.slane %v565_v43, %v619_v5 }
  0xe7   :  { %573 = vbcast.lane.b32.xlu1 %v571_v44, 256  ;;  %580 = vbcast.lane.b32.xlu0 %v578_v45, 256 }
  0xe9   :  { %v1340_v49 = vpop.eup %1339 }
  0xea   :  { %v567_v57 = vmul.f32 %v1340_v49, %v1462_v53  ;;  %v714_v49 = vmul.f32 5.0, %v1476_v61 }
  0xeb   :  { %587 = vbcast.lane.b32.xlu1 %v585_v50, 256  ;;  %601 = vbcast.lane.b32.xlu0 %v599_v54, 256 }
  0xec   :  { %v627_v63 = vrot.slane %v567_v57, %v1419_v10  ;;  %v641_v6 = vrot.slane %v567_v57, %v584_v46  ;;  %v634_v53 = vrot.slane %v567_v57, %v577_v38  ;;  %v655_v11 = vrot.slane %v567_v57, %v598_v47 }
  0xed   :  { %v648_v12 = vrot.slane %v567_v57, %v591_v55  ;;  %v669_v13 = vrot.slane %v567_v57, %v612_v56  ;;  %v662_v14 = vrot.slane %v567_v57, %v605_v62  ;;  %v676_v10 = vrot.slane %v567_v57, %v619_v5 }
  0xef   :  { %594 = vbcast.lane.b32.xlu1 %v592_v51, 256  ;;  %615 = vbcast.lane.b32.xlu0 %v613_v59, 256  ;;  %v715_v59 = vmul.f32 5.0, %v1536_v41 }
  0xf3   :  { %608 = vbcast.lane.b32.xlu1 %v606_v3, 256  ;;  %629 = vbcast.lane.b32.xlu0 %v627_v63, 256  ;;  %v716_v63 = vmul.f32 5.0, %v1483_v2 }
  0xf7   :  { %622 = vbcast.lane.b32.xlu1 %v620_v8, 256  ;;  %643 = vbcast.lane.b32.xlu0 %v641_v6, 256 }
  0xfb   :  { %636 = vbcast.lane.b32.xlu1 %v634_v53, 256  ;;  %657 = vbcast.lane.b32.xlu0 %v655_v11, 256 }
  0xff   :  { %650 = vbcast.lane.b32.xlu1 %v648_v12, 256  ;;  %671 = vbcast.lane.b32.xlu0 %v669_v13, 256 }
 0x103   :  { %664 = vbcast.lane.b32.xlu1 %v662_v14, 256  ;;  %v717_v14 = vmul.f32 5.0, %v1488_v7 }
 0x107   :  { %678 = vbcast.lane.b32.xlu1 %v676_v10, 256  ;;  %v718_v10 = vmul.f32 5.0, %v1538_v42 }
 0x112   :  { %v507_v15 = vpop.xlane.xlu0 %506 }
 0x113   :  { %v744_v33 = vmul.f32 16.666666, %v507_v15 }
 0x116   :  { %v513_v4 = vpop.xlane.xlu0 %512  ;;  %v519_v18 = vpop.xlane.xlu1 %518 }
 0x117   :  { %v746_v47 = vmul.f32 16.666666, %v513_v4  ;;  %v748_v50 = vmul.f32 16.666666, %v519_v18 }
 0x11a   :  { %v522_v17 = vpop.xlane.xlu0 %521 }
 0x11b   :  { %v749_v13 = vmul.f32 16.666666, %v522_v17 }
 0x11e   :  { %v1642_v20 = vpop.xlane.xlu0 %533 }
 0x122   :  { %v531_v19 = vpop.xlane.xlu1 %530 }
 0x123   :  { %v752_v15 = vmul.f32 16.666666, %v531_v19  ;;  %v720_v19 = vmul.f32 5.0, %v1508_v24 }
 0x12a   :  { %v1644_v21 = vpop.xlane.xlu1 %542 }
 0x12c   :  { %v1646_v22 = vpop.xlane.xlu0 %545 }
 0x12e   :  { %v510_v23 = vpop.xlane.xlu1 %509 }
 0x12f   :  { %v745_v37 = vmul.f32 16.666666, %v510_v23 }
 0x130   :  { %v516_v25 = vpop.xlane.xlu0 %515 }
 0x131   :  { %v747_v62 = vmul.f32 16.666666, %v516_v25 }
 0x132   :  { %v525_v26 = vpop.xlane.xlu1 %524 }
 0x133   :  { %v750_v3 = vmul.f32 16.666666, %v525_v26 }
 0x134   :  { %v528_v27 = vpop.xlane.xlu0 %527 }
 0x136   :  { %v537_v28 = vpop.xlane.xlu1 %536 }
 0x138   :  { %v1648_v29 = vpop.xlane.xlu0 %539 }
 0x13a   :  { %v1650_v30 = vpop.xlane.xlu1 %548 }
 0x13c   :  { %v1652_v31 = vpop.xlane.xlu0 %551 }
 0x159   :  { %v1656_v38 = vpop.permute.xlu1 %573  ;;  %v1658_v40 = vpop.permute.xlu0 %580 }
 0x15a   :  { %v728_v43 = vmul.f32 %v712_v32, %v1656_v38  ;;  %v1662_v44 = vmul.f32 %v744_v33, %v1656_v38  ;;  %v729_v45 = vmul.f32 %v713_v35, %v1658_v40  ;;  %v1666_v46 = vmul.f32 %v745_v37, %v1658_v40 }
 0x15b   :  { %v719_v32 = vmul.f32 5.0, %v1551_v48  ;;  %v751_v33 = vmul.f32 16.666666, %v528_v27  ;;  %v754_v35 = vmul.f32 16.666666, %v537_v28  ;;  %v721_v28 = vmul.f32 5.0, %v1499_v16 }
 0x15c   :  { %795 = vperm.xlu0 %1311, %v728_v43   ;;  %800 = vperm.xlu1 %1312, %v729_v45   ;;  %v753_v27 = vmul.f32 16.666666, %v1642_v20 }
 0x15d   :  { %v1669_v54 = vpop.permute.xlu1 %587  ;;  %v1671_v55 = vpop.permute.xlu0 %601 }
 0x15e   :  { %v730_v56 = vmul.f32 %v714_v49, %v1669_v54  ;;  %v1675_v57 = vmul.f32 %v746_v47, %v1669_v54  ;;  %v1678_v51 = vmul.f32 %v748_v50, %v1671_v55  ;;  %v732_v11 = vmul.f32 %v716_v63, %v1671_v55 }
 0x160   :  { %805 = vperm.xlu1 %1312, %v730_v56   ;;  %v722_v56 = vmul.f32 5.0, %v1556_v52 }
 0x161   :  { %v1682_v5 = vpop.permute.xlu1 %594  ;;  %v1684_v6 = vpop.permute.xlu0 %615 }
 0x162   :  { %v731_v8 = vmul.f32 %v715_v59, %v1682_v5  ;;  %v1688_v53 = vmul.f32 %v747_v62, %v1682_v5  ;;  %v1692_v12 = vmul.f32 %v750_v3, %v1684_v6  ;;  %v734_v26 = vmul.f32 %v718_v10, %v1684_v6 }
 0x163   :  { %v756_v59 = vmul.f32 16.666666, %v1644_v21  ;;  %v724_v21 = vmul.f32 5.0, %v1527_v36 }
 0x164   :  { %810 = vperm.xlu0 %1311, %v731_v8   ;;  %815 = vperm.xlu1 %1312, %v732_v11  }
 0x165   :  { %v1696_v4 = vpop.permute.xlu1 %608  ;;  %v1698_v18 = vpop.permute.xlu0 %629 }
 0x166   :  { %v733_v23 = vmul.f32 %v717_v14, %v1696_v4  ;;  %v1702_v25 = vmul.f32 %v749_v13, %v1696_v4  ;;  %v1706_v17 = vmul.f32 %v752_v15, %v1698_v18  ;;  %v736_v49 = vmul.f32 %v720_v19, %v1698_v18 }
 0x167   :  { %v723_v13 = vmul.f32 5.0, %v1567_v60  ;;  %v755_v14 = vmul.f32 16.666666, %v1648_v29  ;;  %v726_v29 = vmul.f32 5.0, %v1572_v1 }
 0x168   :  { %820 = vperm.xlu0 %1311, %v733_v23   ;;  %825 = vperm.xlu1 %1312, %v734_v26  }
 0x169   :  { %v1710_v37 = vpop.permute.xlu1 %622  ;;  %v1712_v43 = vpop.permute.xlu0 %643 }
 0x16a   :  { %v735_v45 = vmul.f32 %v719_v32, %v1710_v37  ;;  %v1716_v47 = vmul.f32 %v751_v33, %v1710_v37  ;;  %v1720_v50 = vmul.f32 %v754_v35, %v1712_v43  ;;  %v738_v11 = vmul.f32 %v722_v56, %v1712_v43 }
 0x16b   :  { %v725_v32 = vmul.f32 5.0, %v1532_v39  ;;  %v757_v33 = vmul.f32 16.666666, %v1646_v22  ;;  %v680_v56 = vmul.f32 10.0, %v1471_v58  ;;  %v684_v58 = vmul.f32 10.0, %v1483_v2 }
 0x16c   :  { %830 = vperm.xlu0 %1311, %v735_v45   ;;  %835 = vperm.xlu1 %1312, %v736_v49  }
 0x16d   :  { %v1726_v62 = vpop.permute.xlu1 %636  ;;  %v1728_v63 = vpop.permute.xlu0 %657 }
 0x16e   :  { %v737_v3 = vmul.f32 %v721_v28, %v1726_v62  ;;  %v1732_v8 = vmul.f32 %v753_v27, %v1726_v62  ;;  %v1736_v20 = vmul.f32 %v756_v59, %v1728_v63  ;;  %v740_v26 = vmul.f32 %v724_v21, %v1728_v63 }
 0x16f   :  { %v727_v28 = vmul.f32 5.0, %v1580_v9 }
 0x170   :  { %840 = vperm.xlu0 %1311, %v737_v3   ;;  %845 = vperm.xlu1 %1312, %v738_v11   ;;  %v696_v3 = vmul.f32 %v680_v56, %v1656_v38  ;;  %v681_v11 = vmul.f32 10.0, %v1522_v34  ;;  %v683_v38 = vmul.f32 10.0, %v1536_v41  ;;  %v1775_v34 = vmul.f32 %v684_v58, %v1671_v55 }
 0x171   :  { %v1741_v10 = vpop.permute.xlu1 %650  ;;  %v1750_v19 = vpop.permute.xlu0 %671  ;;  %v688_v41 = vmul.f32 10.0, %v1508_v24  ;;  %v687_v55 = vmul.f32 10.0, %v1551_v48  ;;  %v777_v58 = vand.u32 127, %v266_v0 }
 0x172   :  { %v739_v15 = vmul.f32 %v723_v13, %v1741_v10  ;;  %v1745_v23 = vmul.f32 %v755_v14, %v1741_v10  ;;  %v742_v27 = vmul.f32 %v726_v29, %v1750_v19  ;;  %v1368_v13 = vmov 1   ;;  %v1794_v24 = vpop.f32.mrb[0].mxu0 }
 0x173   :  { %v682_v14 = vmul.f32 10.0, %v1476_v61  ;;  %v697_v21 = vmul.f32 %v681_v11, %v1658_v40  ;;  %v686_v61 = vmul.f32 10.0, %v1538_v42  ;;  %v685_v40 = vmul.f32 10.0, %v1488_v7 }
 0x174   :  { %850 = vperm.xlu0 %1311, %v739_v15   ;;  %855 = vperm.xlu1 %1312, %v740_v26   ;;  %v699_v26 = vmul.f32 %v683_v38, %v1682_v5  ;;  %v704_v5 = vmul.f32 %v688_v41, %v1698_v18  ;;  %v703_v42 = vmul.f32 %v687_v55, %v1710_v37  ;;  %v689_v7 = vmul.f32 10.0, %v1499_v16  ;;  %v1802_v16 = vpop.f32.mrb[0].mxu1 }
 0x175   :  { %v1753_v35 = vpop.permute.xlu1 %664  ;;  %v698_v15 = vmul.f32 %v682_v14, %v1669_v54  ;;  %v1782_v54 = vmul.f32 %v686_v61, %v1684_v6  ;;  %v701_v2 = vmul.f32 %v685_v40, %v1696_v4  ;;  %v1369_v37 = vmov 0  }
 0x176   :  { %v741_v45 = vmul.f32 %v725_v32, %v1753_v35  ;;  %v1757_v49 = vmul.f32 %v757_v33, %v1753_v35  ;;  %v690_v32 = vmul.f32 10.0, %v1556_v52  ;;  %v705_v4 = vmul.f32 %v689_v7, %v1726_v62  ;;  %v1796_v33 = vpop.f32.mrb[1].mxu0 }
 0x177   :  { %v1798_v48 = vpop.f32.mrb[2].mxu0  ;;  %v691_v52 = vmul.f32 10.0, %v1567_v60  ;;  %v695_v11 = vmul.f32 10.0, %v1580_v9  ;;  %v1843_v38 = vand.u32 3, %v777_v58 }
 0x178   :  { %860 = vperm.xlu0 %1311, %v741_v45   ;;  %865 = vperm.xlu1 %1312, %v742_v27   ;;  %v706_v6 = vmul.f32 %v690_v32, %v1712_v43  ;;  %v1800_v18 = vpop.f32.mrb[3].mxu0  ;;  %v1805_v43 = vpop.f32.mrb[1].mxu1  ;;  %v692_v45 = vmul.f32 10.0, %v1527_v36 }
 0x179   :  { %v1761_v22 = vpop.permute.xlu1 %678  ;;  %v707_v62 = vmul.f32 %v691_v52, %v1741_v10  ;;  %v1809_v29 = vpop.f32.mrb[2].mxu1  ;;  %vm792_vm3 = vcmp.eq.s32.totalorder %v1843_v38, 2  ;;  %vm791_vm4 = vcmp.eq.s32.totalorder %v1843_v38, 1  ;;  %vm790_vm5 = vcmp.eq.s32.totalorder %v1843_v38, 0 }
 0x17a   :  { %v743_v59 = vmul.f32 %v727_v28, %v1761_v22  ;;  %v1812_v27 = vpop.f32.mrb[3].mxu1  ;;  %v708_v28 = vmul.f32 %v692_v45, %v1728_v63  ;;  %v1819_v56 = vpop.f32.mrb[4].mxu0  ;;  %v693_v63 = vmul.f32 10.0, %v1532_v39 }
 0x17b   :  { %v1815_v60 = vpop.f32.mrb[4].mxu1  ;;  %v1821_v36 = vpop.f32.mrb[5].mxu0 }
 0x17c   :  { %870 = vperm.xlu0 %1311, %v743_v59   ;;  %1313 = vset.pattern.permute.xlu1 %v1368_v13  ;;  %v1817_v10 = vpop.f32.mrb[5].mxu1  ;;  %v1823_v59 = vpop.f32.mrb[6].mxu0  ;;  %v709_v14 = vmul.f32 %v693_v63, %v1753_v35 }
 0x17d   :  { %891 = vperm.xlu1 %1313, %v696_v3   ;;  %v1837_v9 = vpop.f32.mrb[6].mxu1 }
 0x17e   :  { %v1839_v35 = vpop.f32.mrb[7].mxu1 }
 0x180   :  { %1314 = vset.pattern.permute.xlu0 %v1368_v13 }
 0x181   :  { %896 = vperm.xlu0 %1314, %v697_v21   ;;  %901 = vperm.xlu1 %1313, %v698_v15  }
 0x185   :  { %911 = vperm.xlu0 %1314, %v1775_v34   ;;  %906 = vperm.xlu1 %1313, %v699_v26  }
 0x189   :  { %921 = vperm.xlu0 %1314, %v1782_v54   ;;  %916 = vperm.xlu1 %1313, %v701_v2  }
 0x18d   :  { %931 = vperm.xlu0 %1314, %v704_v5   ;;  %926 = vperm.xlu1 %1313, %v703_v42  }
 0x191   :  { %941 = vperm.xlu0 %1314, %v706_v6   ;;  %936 = vperm.xlu1 %1313, %v705_v4  }
 0x195   :  { %1316 = vset.pattern.permute.xlu0 %v1369_v37  ;;  %1315 = vset.pattern.permute.xlu1 %v1369_v37 }
 0x196   :  { %990 = vperm.xlu0 %1316, %v697_v21   ;;  %986 = vperm.xlu1 %1315, %v696_v3   ;;  %v1825_v3 = vpop.f32.mrb[7].mxu0  ;;  %v711_v21 = vmul.f32 %v695_v11, %v1761_v22 }
 0x19a   :  { %1317 = vset.pattern.permute.xlu0 %v1368_v13  ;;  %1018 = vperm.xlu1 %1315, %v704_v5  }
 0x19b   :  { %946 = vperm.xlu0 %1317, %v707_v62  }
 0x19e   :  { %1022 = vperm.xlu1 %1315, %v705_v4   ;;  %v758_v4 = vmul.f32 16.666666, %v1650_v30 }
 0x19f   :  { %951 = vperm.xlu0 %1317, %v708_v28  }
 0x1a2   :  { %994 = vperm.xlu1 %1315, %v698_v15   ;;  %v694_v15 = vmul.f32 10.0, %v1572_v1 }
 0x1a3   :  { %1318 = vset.pattern.permute.xlu0 %v1369_v37 }
 0x1a4   :  { %1030 = vperm.xlu0 %1318, %v707_v62   ;;  %v710_v39 = vmul.f32 %v694_v15, %v1750_v19 }
 0x1a6   :  { %1026 = vperm.xlu1 %1315, %v706_v6  }
 0x1a8   :  { %1034 = vperm.xlu0 %1318, %v708_v28  }
 0x1aa   :  { %998 = vperm.xlu1 %1315, %v699_v26  }
 0x1ac   :  { %1006 = vperm.xlu0 %1318, %v701_v2  }
 0x1ae   :  { %1319 = vset.pattern.permute.xlu1 %v1368_v13 }
 0x1af   :  { %956 = vperm.xlu1 %1319, %v709_v14  }
 0x1b0   :  { %1323 = vset.pattern.permute.xlu0 %v1368_v13 }
 0x1b1   :  { %966 = vperm.xlu0 %1323, %v711_v21  }
 0x1b3   :  { %1320 = vset.pattern.permute.xlu1 %v1369_v37 }
 0x1b4   :  { %1002 = vperm.xlu1 %1320, %v1775_v34  }
 0x1b5   :  { %1324 = vset.pattern.permute.xlu0 %v1369_v37 }
 0x1b6   :  { %1014 = vperm.xlu0 %1324, %v703_v42  }
 0x1b8   :  { %1321 = vset.pattern.permute.xlu1 %v1368_v13 }
 0x1b9   :  { %961 = vperm.xlu1 %1321, %v710_v39  }
 0x1bd   :  { %1322 = vset.pattern.permute.xlu1 %v1369_v37  ;;  %v774_v37 = vmul.f32 %v758_v4, %v1750_v19 }
 0x1be   :  { %1038 = vperm.xlu1 %1322, %v709_v14  }
 0x1c2   :  { %1010 = vperm.xlu1 %1322, %v1782_v54  }
 0x1c6   :  { %1042 = vperm.xlu1 %1322, %v710_v39  }
 0x1ca   :  { %1046 = vperm.xlu1 %1322, %v711_v21   ;;  %v1920_v21 = vld [vmem:[%s2115_s5] ss:$0 sm:$0xff]  ;;  %s1370_s5 = smov [#allocation2]  }
 0x1cb   :  { %v167_v39 = vadd.f32 %v1920_v21, %v1800_v18  ;;  %s1239_s28 = sshll.u32 %s1370_s5, 4  ;;  %s1240_s28 = int_to_ptr.vmem [resolvable:$true] %s1239_s28 }
 0x1cc   :  { %s1341_s29 = scalar_lea.vmem %s1240_s28, 256  ;;  %p1346_p1 = scmp.lt.s32.totalorder %s1240_s28, %s1240_s28 }
 0x1cd   :  { %p1342_p0 = scmp.ne.s32.totalorder %s1240_s28, %s1341_s29  ;;  %p1347_p2 = scmp.lt.s32.totalorder %s1341_s29, %s1341_s29 }
 0x1cf   :  { %p1348_p3 = por %p1347_p2, %p1346_p1 }
 0x1d1   :  { %p1349_p4 = pnand %p1348_p3, %p1342_p0 }
 0x1db   :  { %v796_v1 = vpop.permute.xlu0 %795  ;;  %v801_v34 = vpop.permute.xlu1 %800 }
 0x1dc   :  { %v873_v13 = vsel %vm792_vm3, %v796_v1, %v1662_v44  ;;  %v874_v26 = vsel %vm792_vm3, %v801_v34, %v1666_v46  ;;  %v164_v1 = vadd.f32 %v1920_v21, %v1796_v33 }
 0x1df   :  { %v806_v61 = vpop.permute.xlu1 %805 }
 0x1e0   :  { %v1855_v40 = vsel %vm792_vm3, %v806_v61, %v1675_v57  ;;  %v227_v61 = vmax.f32 %v167_v39, 0.0 }
 0x1e3   :  { %v811_v0 = vpop.permute.xlu0 %810  ;;  %v816_v54 = vpop.permute.xlu1 %815 }
 0x1e4   :  { %v1860_v2 = vsel %vm792_vm3, %v811_v0, %v1688_v53  ;;  %v1865_v44 = vsel %vm792_vm3, %v816_v54, %v1678_v51  ;;  %v226_v0 = vmax.f32 %v164_v1, 0.0  ;;  %v196_v54 = vadd.f32 %v1920_v21, %v1805_v43 }
 0x1e5   :  { %v199_v43 = vadd.f32 %v1920_v21, %v1812_v27  ;;  %v207_v1 = vadd.f32 %v1809_v29, %v1920_v21 }
 0x1e6   :  { %v234_v4 = vmax.f32 %v196_v54, 0.0 }
 0x1e7   :  { %v821_v41 = vpop.permute.xlu0 %820  ;;  %v826_v46 = vpop.permute.xlu1 %825 }
 0x1e8   :  { %v1870_v55 = vsel %vm792_vm3, %v821_v41, %v1702_v25  ;;  %v1875_v57 = vsel %vm792_vm3, %v826_v46, %v1692_v12 }
 0x1eb   :  { %v831_v5 = vpop.permute.xlu0 %830  ;;  %v836_v53 = vpop.permute.xlu1 %835 }
 0x1ec   :  { %v1880_v42 = vsel %vm792_vm3, %v831_v5, %v1716_v47  ;;  %v881_v51 = vsel %vm792_vm3, %v836_v53, %v1706_v17 }
 0x1ef   :  { %v841_v32 = vpop.permute.xlu0 %840  ;;  %v846_v7 = vpop.permute.xlu1 %845 }
 0x1f0   :  { %v1888_v25 = vsel %vm792_vm3, %v846_v7, %v1720_v50 }
 0x1f3   :  { %v1890_v12 = vpop.permute.xlu0 %850  ;;  %v856_v6 = vpop.permute.xlu1 %855 }
 0x1f4   :  { %v1896_v47 = vsel %vm792_vm3, %v856_v6, %v1736_v20 }
 0x1f7   :  { %v1899_v17 = vpop.permute.xlu0 %860  ;;  %v866_v52 = vpop.permute.xlu1 %865 }
 0x1f8   :  { %v1903_v62 = vsel %vm792_vm3, %v866_v52, %v774_v37  ;;  %v1948_v37 = vadd.f32 %v1798_v48, %v1920_v21  ;;  %v1960_v48 = vadd.f32 %v1802_v16, %v1920_v21 }
 0x1fb   :  { %v1905_v50 = vpop.permute.xlu0 %870 }
 0x1fc   :  { %v892_v45 = vpop.permute.xlu1 %891 }
 0x1fd   :  { %v969_v18 = vsel %vm791_vm4, %v892_v45, %v873_v13 }
 0x200   :  { %v897_v28 = vpop.permute.xlu0 %896  ;;  %v1907_v63 = vpop.permute.xlu1 %901 }
 0x201   :  { %v970_v41 = vsel %vm791_vm4, %v897_v28, %v874_v26  ;;  %v172_v26 = vadd.f32 %v1794_v24, %v1920_v21 }
 0x204   :  { %v1909_v30 = vpop.permute.xlu0 %911  ;;  %v1911_v11 = vpop.permute.xlu1 %906 }
 0x208   :  { %v1913_v20 = vpop.permute.xlu0 %921  ;;  %v1915_v19 = vpop.permute.xlu1 %916 }
 0x20c   :  { %v932_v14 = vpop.permute.xlu0 %931  ;;  %v1922_v15 = vpop.permute.xlu1 %926 }
 0x20d   :  { %v977_v52 = vsel %vm791_vm4, %v932_v14, %v881_v51  ;;  %v882_v51 = vsel %vm792_vm3, %v841_v32, %v1732_v8  ;;  %v228_v14 = vmax.f32 %v172_v26, 0.0  ;;  %v236_v32 = vmax.f32 %v1960_v48, 0.0 }
 0x210   :  { %v1926_v58 = vpop.permute.xlu0 %941  ;;  %v937_v34 = vpop.permute.xlu1 %936 }
 0x215   :  { %v991_v46 = vpop.permute.xlu0 %990  ;;  %v987_v5 = vpop.permute.xlu1 %986 }
 0x216   :  { %v1050_v33 = vsel %vm790_vm5, %v991_v46, %v970_v41  ;;  %v1049_v53 = vsel %vm790_vm5, %v987_v5, %v969_v18  ;;  %v235_v41 = vmax.f32 %v199_v43, 0.0  ;;  %v229_v46 = vmax.f32 %v1948_v37, 0.0 }
 0x217   :  { %v1066_v7 = vmul.f32 %v1050_v33, %v227_v61  ;;  %v1065_v6 = vmul.f32 %v1049_v53, %v226_v0  ;;  %v978_v18 = vsel %vm791_vm4, %v937_v34, %v882_v51  ;;  %v237_v53 = vmax.f32 %v207_v1, 0.0 }
 0x218   :  { %v884_v34 = vsel %vm792_vm3, %v1890_v12, %v1745_v23 }
 0x219   :  { %v1088_v13 = vsel %vm104_vm2, %v1066_v7, 0.0  ;;  %v1081_v45 = vsel %vm104_vm2, %v1065_v6, 0.0  ;;  %v1019_v39 = vpop.permute.xlu1 %1018 }
 0x21a   :  { %v1089_v28 = vrot.slane %v1088_v13, 4  ;;  %v947_v27 = vpop.permute.xlu0 %946  ;;  %v1082_v61 = vrot.slane %v1081_v45, 4  ;;  %v1057_v24 = vsel %vm790_vm5, %v1019_v39, %v977_v52  ;;  %v971_v39 = vsel %vm791_vm4, %v1907_v63, %v1855_v40 }
 0x21b   :  { %v1073_v54 = vmul.f32 %v1057_v24, %v234_v4 }
 0x21c   :  { %v1090_v0 = vadd.f32 %v1089_v28, %v1088_v13  ;;  %v1083_v29 = vadd.f32 %v1082_v61, %v1081_v45  ;;  %v212_v13 = vadd.f32 %v1920_v21, %v1817_v10  ;;  %v183_v28 = vadd.f32 %v1920_v21, %v1825_v3 }
 0x21d   :  { %v1137_v33 = vsel %vm104_vm2, %v1073_v54, 0.0  ;;  %v1023_v7 = vpop.permute.xlu1 %1022  ;;  %v980_v61 = vsel %vm791_vm4, %v947_v27, %v884_v34 }
 0x21e   :  { %v1091_v5 = vrot.slane %v1090_v0, 2  ;;  %v952_v16 = vpop.permute.xlu0 %951  ;;  %v1084_v6 = vrot.slane %v1083_v29, 2  ;;  %v1138_v4 = vrot.slane %v1137_v33, 4  ;;  %v1058_v43 = vsel %vm790_vm5, %v1023_v7, %v978_v18 }
 0x21f   :  { %v1074_v26 = vmul.f32 %v1058_v43, %v235_v41  ;;  %v238_v40 = vmax.f32 %v212_v13, 0.0 }
 0x220   :  { %v1092_v8 = vadd.f32 %v1091_v5, %v1090_v0  ;;  %v1085_v52 = vadd.f32 %v1084_v6, %v1083_v29  ;;  %v1139_v45 = vadd.f32 %v1138_v4, %v1137_v33  ;;  %v979_v5 = vsel %vm791_vm4, %v1926_v58, %v1888_v25 }
 0x221   :  { %v1144_v10 = vsel %vm104_vm2, %v1074_v26, 0.0  ;;  %v995_v24 = vpop.permute.xlu1 %994  ;;  %v981_v33 = vsel %vm791_vm4, %v952_v16, %v1896_v47  ;;  %v231_v6 = vmax.f32 %v183_v28, 0.0  ;;  %v180_v25 = vadd.f32 %v1920_v21, %v1821_v36 }
 0x222   :  { %v1093_v1 = vrot.slane %v1092_v8, 1  ;;  %v1086_v0 = vrot.slane %v1085_v52, 1  ;;  %v1140_v48 = vrot.slane %v1139_v45, 2  ;;  %v1145_v23 = vrot.slane %v1144_v10, 4 }
 0x223   :  { %v1051_v12 = vsel %vm790_vm5, %v995_v24, %v971_v39  ;;  %v1031_v54 = vpop.permute.xlu0 %1030  ;;  %v972_v58 = vsel %vm791_vm4, %v1911_v11, %v1860_v2  ;;  %v974_v28 = vsel %vm791_vm4, %v1915_v19, %v1870_v55 }
 0x224   :  { %v1094_v3 = vadd.f32 %v1093_v1, %v1092_v8  ;;  %v1067_v41 = vmul.f32 %v1051_v12, %v228_v14  ;;  %v1060_v51 = vsel %vm790_vm5, %v1031_v54, %v980_v61  ;;  %v1087_v63 = vadd.f32 %v1086_v0, %v1085_v52 }
 0x225   :  { %v1141_v29 = vadd.f32 %v1140_v48, %v1139_v45  ;;  %v1146_v18 = vadd.f32 %v1145_v23, %v1144_v10  ;;  %v1076_v27 = vmul.f32 %v1060_v51, %v237_v53  ;;  %v1027_v14 = vpop.permute.xlu1 %1026  ;;  %v191_v51 = vadd.f32 %v1823_v59, %v1920_v21 }
 0x226   :  { %v1095_v7 = vsel %vm104_vm2, %v1067_v41, 0.0  ;;  %v1210_v4 = vsel %vm1209_vm6, %v1094_v3, %v1087_v63  ;;  %v1059_v34 = vsel %vm790_vm5, %v1027_v14, %v979_v5  ;;  %v230_v59 = vmax.f32 %v180_v25, 0.0 }
 0x227   :  { %v1142_v43 = vrot.slane %v1141_v29, 1  ;;  %v1147_v8 = vrot.slane %v1146_v18, 2  ;;  %v1096_v26 = vrot.slane %v1095_v7, 4  ;;  %v1035_v13 = vpop.permute.xlu0 %1034  ;;  %v1158_v53 = vsel %vm104_vm2, %v1076_v27, 0.0 }
 0x228   :  { %v1061_v47 = vsel %vm790_vm5, %v1035_v13, %v981_v33  ;;  %v1159_v45 = vrot.slane %v1158_v53, 4  ;;  %v1075_v1 = vmul.f32 %v1059_v34, %v236_v32  ;;  %v976_v25 = vsel %vm791_vm4, %v1922_v15, %v1880_v42 }
 0x229   :  { %v1148_v16 = vadd.f32 %v1147_v8, %v1146_v18  ;;  %v1097_v52 = vadd.f32 %v1096_v26, %v1095_v7  ;;  %v1143_v39 = vadd.f32 %v1142_v43, %v1141_v29  ;;  %v1077_v61 = vmul.f32 %v1061_v47, %v238_v40  ;;  %v999_v36 = vpop.permute.xlu1 %998 }
 0x22a   :  { %v1160_v0 = vadd.f32 %v1159_v45, %v1158_v53  ;;  %v1052_v48 = vsel %vm790_vm5, %v999_v36, %v972_v58  ;;  %v1151_v2 = vsel %vm104_vm2, %v1075_v1, 0.0  ;;  %v233_v53 = vmax.f32 %v191_v51, 0.0 }
 0x22b   :  { %v1149_v10 = vrot.slane %v1148_v16, 1  ;;  %v1098_v24 = vrot.slane %v1097_v52, 2  ;;  %v1007_v23 = vpop.permute.xlu0 %1006  ;;  %v1165_v11 = vsel %vm104_vm2, %v1077_v61, 0.0  ;;  %v1068_v12 = vmul.f32 %v1052_v48, %v229_v46 }
 0x22c   :  { %v1054_v55 = vsel %vm790_vm5, %v1007_v23, %v974_v28  ;;  %v1161_v54 = vrot.slane %v1160_v0, 2  ;;  %v1152_v3 = vrot.slane %v1151_v2, 4  ;;  %v1166_v41 = vrot.slane %v1165_v11, 4 }
 0x22d   :  { %v1150_v19 = vadd.f32 %v1149_v10, %v1148_v16  ;;  %v1099_v32 = vadd.f32 %v1098_v24, %v1097_v52  ;;  %v1102_v40 = vsel %vm104_vm2, %v1068_v12, 0.0  ;;  %v1070_v63 = vmul.f32 %v1054_v55, %v231_v6 }
 0x22e   :  { %v1162_v27 = vadd.f32 %v1161_v54, %v1160_v0  ;;  %v1153_v37 = vadd.f32 %v1152_v3, %v1151_v2  ;;  %v957_v46 = vpop.permute.xlu1 %956  ;;  %v1167_v5 = vadd.f32 %v1166_v41, %v1165_v11  ;;  %v1103_v33 = vrot.slane %v1102_v40, 4 }
 0x22f   :  { %v1223_v29 = vsel %vm1209_vm6, %v1150_v19, %v1143_v39  ;;  %v1100_v18 = vrot.slane %v1099_v32, 1  ;;  %v1116_v7 = vsel %vm104_vm2, %v1070_v63, 0.0  ;;  %v973_v16 = vsel %vm791_vm4, %v1909_v30, %v1865_v44 }
 0x230   :  { %v2028_v14 = vpop.permute.xlu0 %966  ;;  %v1154_v8 = vrot.slane %v1153_v37, 2  ;;  %v1117_v26 = vrot.slane %v1116_v7, 4  ;;  %v1168_v13 = vrot.slane %v1167_v5, 2  ;;  %v1104_v6 = vadd.f32 %v1103_v33, %v1102_v40 }
 0x231   :  { %v1101_v43 = vadd.f32 %v1100_v18, %v1099_v32  ;;  %v1163_v47 = vrot.slane %v1162_v27, 1  ;;  %v215_v23 = vadd.f32 %v1920_v21, %v1839_v35  ;;  %v188_v35 = vadd.f32 %v1819_v56, %v1920_v21 }
 0x232   :  { %v1155_v58 = vadd.f32 %v1154_v8, %v1153_v37  ;;  %v1169_v52 = vadd.f32 %v1168_v13, %v1167_v5  ;;  %v1105_v45 = vrot.slane %v1104_v6, 2  ;;  %v1118_v28 = vadd.f32 %v1117_v26, %v1116_v7 }
 0x233   :  { %v1212_v34 = vsel %vm1211_vm7, %v1101_v43, %v1210_v4  ;;  %v1003_v39 = vpop.permute.xlu1 %1002  ;;  %v1164_v30 = vadd.f32 %v1163_v47, %v1162_v27  ;;  %v239_v18 = vmax.f32 %v215_v23, 0.0  ;;  %v220_v56 = vadd.f32 %v1815_v60, %v1920_v21 }
 0x234   :  { %v1156_v1 = vrot.slane %v1155_v58, 1  ;;  %v1053_v4 = vsel %vm790_vm5, %v1003_v39, %v973_v16  ;;  %v1170_v36 = vrot.slane %v1169_v52, 1  ;;  %v1106_v10 = vadd.f32 %v1105_v45, %v1104_v6 }
 0x235   :  { %v1015_v61 = vpop.permute.xlu0 %1014  ;;  %v1069_v24 = vmul.f32 %v1053_v4, %v230_v59  ;;  %v1119_v15 = vrot.slane %v1118_v28, 2  ;;  %v232_v8 = vmax.f32 %v188_v35, 0.0  ;;  %v240_v60 = vmax.f32 %v220_v56, 0.0 }
 0x236   :  { %v1056_v44 = vsel %vm790_vm5, %v1015_v61, %v976_v25  ;;  %v1157_v0 = vadd.f32 %v1156_v1, %v1155_v58  ;;  %v1171_v2 = vadd.f32 %v1170_v36, %v1169_v52  ;;  %v1107_v42 = vrot.slane %v1106_v10, 1 }
 0x237   :  { %v1072_v48 = vmul.f32 %v1056_v44, %v233_v53  ;;  %v1109_v11 = vsel %vm104_vm2, %v1069_v24, 0.0  ;;  %v1120_v63 = vadd.f32 %v1119_v15, %v1118_v28  ;;  %v759_v52 = vmul.f32 16.666666, %v1652_v31 }
 0x238   :  { %v1224_v12 = vsel %vm1211_vm7, %v1157_v0, %v1223_v29  ;;  %v1110_v55 = vrot.slane %v1109_v11, 4  ;;  %v962_v19 = vpop.permute.xlu1 %961  ;;  %v1108_v54 = vadd.f32 %v1107_v42, %v1106_v10  ;;  %v886_v29 = vsel %vm792_vm3, %v1899_v17, %v1757_v49 }
 0x239   :  { %v1225_v32 = vsel %vm1213_vm8, %v1164_v30, %v1224_v12  ;;  %v1130_v51 = vsel %vm104_vm2, %v1072_v48, 0.0  ;;  %v982_v37 = vsel %vm791_vm4, %v957_v46, %v886_v29  ;;  %v1121_v26 = vrot.slane %v1120_v63, 1 }
 0x23a   :  { %v2049_v3 = vsel %vm1215_vm9, %v1171_v2, %v1225_v32  ;;  %v1111_v41 = vadd.f32 %v1110_v55, %v1109_v11  ;;  %v1214_v40 = vsel %vm1213_vm8, %v1108_v54, %v1212_v34  ;;  %v1131_v5 = vrot.slane %v1130_v51, 4 }
 0x23b   :  { %v975_v49 = vsel %vm791_vm4, %v1913_v20, %v1875_v57  ;;  %v1122_v58 = vadd.f32 %v1121_v26, %v1120_v63  ;;  %v223_v57 = vadd.f32 %v1837_v9, %v1920_v21  ;;  %v983_v39 = vsel %vm791_vm4, %v962_v19, %v1903_v62 }
 0x23c   :  { %v1112_v27 = vrot.slane %v1111_v41, 2  ;;  %v1132_v17 = vadd.f32 %v1131_v5, %v1130_v51  ;;  %v775_v61 = vmul.f32 %v759_v52, %v1761_v22 }
 0x23d   :  { %v1039_v33 = vpop.permute.xlu1 %1038  ;;  %v241_v0 = vmax.f32 %v223_v57, 0.0 }
 0x23e   :  { %v1113_v7 = vadd.f32 %v1112_v27, %v1111_v41  ;;  %v1062_v43 = vsel %vm790_vm5, %v1039_v33, %v982_v37  ;;  %v1133_v28 = vrot.slane %v1132_v17, 2  ;;  %v888_v9 = vsel %vm792_vm3, %v1905_v50, %v775_v61 }
 0x23f   :  { %v1078_v59 = vmul.f32 %v1062_v43, %v239_v18  ;;  %v984_v62 = vsel %vm791_vm4, %v2028_v14, %v888_v9 }
 0x240   :  { %v1114_v13 = vrot.slane %v1113_v7, 1  ;;  %v1134_v30 = vadd.f32 %v1133_v28, %v1132_v17 }
 0x241   :  { %v1172_v46 = vsel %vm104_vm2, %v1078_v59, 0.0  ;;  %v1011_v53 = vpop.permute.xlu1 %1010 }
 0x242   :  { %v1115_v6 = vadd.f32 %v1114_v13, %v1113_v7  ;;  %v1173_v34 = vrot.slane %v1172_v46, 4  ;;  %v1055_v47 = vsel %vm790_vm5, %v1011_v53, %v975_v49  ;;  %v1135_v19 = vrot.slane %v1134_v30, 1 }
 0x243   :  { %v1071_v16 = vmul.f32 %v1055_v47, %v232_v8 }
 0x244   :  { %v1216_v45 = vsel %vm1215_vm9, %v1115_v6, %v1214_v40  ;;  %v1174_v20 = vadd.f32 %v1173_v34, %v1172_v46  ;;  %v1136_v38 = vadd.f32 %v1135_v19, %v1134_v30 }
 0x245   :  { %v1123_v25 = vsel %vm104_vm2, %v1071_v16, 0.0  ;;  %v1043_v1 = vpop.permute.xlu1 %1042  ;;  %v1218_v4 = vsel %vm1217_vm10, %v1122_v58, %v1216_v45 }
 0x246   :  { %v1175_v36 = vrot.slane %v1174_v20, 2  ;;  %v1124_v31 = vrot.slane %v1123_v25, 4  ;;  %v1063_v10 = vsel %vm790_vm5, %v1043_v1, %v983_v39 }
 0x247   :  { %v1079_v24 = vmul.f32 %v1063_v10, %v240_v60 }
 0x248   :  { %v1176_v21 = vadd.f32 %v1175_v36, %v1174_v20  ;;  %v1125_v44 = vadd.f32 %v1124_v31, %v1123_v25 }
 0x249   :  { %v1179_v22 = vsel %vm104_vm2, %v1079_v24, 0.0  ;;  %v1047_v48 = vpop.permute.xlu1 %1046 }
 0x24a   :  { %v1177_v23 = vrot.slane %v1176_v21, 1  ;;  %v1126_v2 = vrot.slane %v1125_v44, 2  ;;  %v1180_v42 = vrot.slane %v1179_v22, 4  ;;  %v1064_v15 = vsel %vm790_vm5, %v1047_v48, %v984_v62 }
 0x24b   :  { %v1080_v11 = vmul.f32 %v1064_v15, %v241_v0 }
 0x24c   :  { %v1178_v12 = vadd.f32 %v1177_v23, %v1176_v21  ;;  %v1127_v50 = vadd.f32 %v1126_v2, %v1125_v44  ;;  %v1181_v55 = vadd.f32 %v1180_v42, %v1179_v22 }
 0x24d   :  { %v1186_v32 = vsel %vm104_vm2, %v1080_v11, 0.0 }
 0x24e   :  { %v1128_v54 = vrot.slane %v1127_v50, 1  ;;  %v1182_v14 = vrot.slane %v1181_v55, 2  ;;  %v1187_v41 = vrot.slane %v1186_v32, 4  ;;  %v1227_v51 = vsel %vm1217_vm10, %v1178_v12, %v2049_v3 }
 0x250   :  { %v1129_v35 = vadd.f32 %v1128_v54, %v1127_v50  ;;  %v1183_v40 = vadd.f32 %v1182_v14, %v1181_v55  ;;  %v1188_v63 = vadd.f32 %v1187_v41, %v1186_v32 }
 0x252   :  { %v1184_v18 = vrot.slane %v1183_v40, 1  ;;  %v1189_v29 = vrot.slane %v1188_v63, 2  ;;  %v1220_v27 = vsel %vm1219_vm11, %v1129_v35, %v1218_v4 }
 0x253   :  { %v1222_v37 = vsel %vm1221_vm12, %v1136_v38, %v1220_v27 }
 0x254   :  { %v1185_v5 = vadd.f32 %v1184_v18, %v1183_v40  ;;  %v1190_v33 = vadd.f32 %v1189_v29, %v1188_v63  ;;  %1232 = vst.msk [vmem:[#allocation2] sm:$0xff] %vm104_vm2, %v1222_v37 }
 0x256   :  { %v1191_v7 = vrot.slane %v1190_v33, 1  ;;  %v1228_v43 = vsel %vm1219_vm11, %v1185_v5, %v1227_v51 }
 0x258   :  { %v1192_v56 = vadd.f32 %v1191_v7, %v1190_v33 }
 0x25a   :  { %v1229_v3 = vsel %vm1221_vm12, %v1192_v56, %v1228_v43 }
 0x25b   :  { %1233 = vst.msk [vmem:[#allocation2 + $0x8] sm:$0xff] %vm104_vm2, %v1229_v3 }
 0x25c   :  { %1352 = shalt.err (!%p1349_p4)
}
 0x25d   :  { %s1353_s8 = scalar_lea.hbm %s2116_s6, 256 }
 0x25e   :  { %p1354_p5 = scmp.ne.s32.totalorder %s2116_s6, %s1353_s8  ;;  %p1357_p6 = scmp.lt.u32.totalorder %s1353_s8, %s2116_s6 }
 0x260   :  { %p1359_p7 = pnand %p1357_p6, %p1354_p5 }
 0x262   :  { %1362 = shalt.err (!%p1359_p7)
}
 0x263   :  { %s1371_s11 = smov 128   ;;  %s1372_s12 = smov 8  }
 0x264   :  { %1245 = dma.vmem_to_hbm [thread:$0]  %s1240_s28, 256, %s2116_s6, [#allocation3], %s1371_s11, %s1371_s11, %s1372_s12  }
 0x265   :  { %1363 = dma.done.wait [#allocation3], 256  }
 0x266   :  { %1364 = vsyncadd [#allocation3], 4294967040 }
 0x267   :  { %1249 = vsyncpa [#allocation3], 1 }

</bundles_post_ra>
